<compile_context>
chip_gen: v7x
topology: tpu7x:2x2x1
jax: 0.10.0
libtpu: 0.0.40
codegen_flags: <defaults>
</compile_context>

<pallas_src>
import jax
import jax.numpy as jnp
from jax.experimental import pallas as pl
from jax.experimental.pallas import tpu as pltpu

# ----- static problem sizes (small, consistent with the module) -----
N = 2          # batch
C = 128        # channels (fixed by Conv1d(128->1) / BatchNorm1d(128))
L = 16         # sequence length
EPS = 1e-5     # BatchNorm1d eps


def ramod3_kernel(x_ref, w_ref, gamma_ref, beta_ref, out_ref):
    # x_ref     : (N*L, 128)  channels-last activations
    # w_ref     : (1, 128)    Conv1d(128->1, k=1) weight as a channel row
    # gamma_ref : (1, 128)    BN weight
    # beta_ref  : (1, 128)    BN bias
    # out_ref   : (N*L, 128)

    x = x_ref[...]                                          # (N*L, 128)
    w = w_ref[...]                                          # (1, 128)

    # x2[n*L + l] = sum_c w[c] * x[n, l, c]   (lane reduction, one column)
    x2 = jnp.sum(x * w, axis=-1, keepdims=True)             # (N*L, 1)

    # Per-batch x1 (mean over L) and the rank-1 outer product x1 (x) x2,
    # expressed channels-last: x_all[n, l, c] = x2[n, l] * x1[n, c].
    parts = []
    for n in range(N):                                      # tiny static batch loop
        xb = x[n * L:(n + 1) * L, :]                        # (L, 128), sublane-aligned
        x1 = jnp.mean(xb, axis=0, keepdims=True)            # (1, 128)
        parts.append(x2[n * L:(n + 1) * L, :] * x1)         # (L, 128)
    xall = jnp.concatenate(parts, axis=0)                   # (N*L, 128)

    # ---- BatchNorm1d(128), training mode: batch statistics over (N, L),
    #      biased variance, then sigmoid ----
    mean = jnp.mean(xall, axis=0, keepdims=True)            # (1, 128)
    var = jnp.mean(jnp.square(xall - mean), axis=0, keepdims=True)
    y = (xall - mean) * jax.lax.rsqrt(var + EPS)
    y = y * gamma_ref[...] + beta_ref[...]
    s = 1.0 / (1.0 + jnp.exp(-y))                           # sigmoid (EUP exp + recip)

    # ---- output = x_all * input + input + x_all ----
    out_ref[...] = s * x + x + s                            # full 128-lane stores


def ramod3_forward(x_ncl, w_conv, gamma, beta):
    """x_ncl: (N, 128, L) float32 (PyTorch NCL). Returns (N, 128, L)."""
    x_flat = jnp.transpose(x_ncl, (0, 2, 1)).reshape(N * L, C).astype(jnp.float32)
    # PyTorch Conv1d(128->1, k=1, bias=False) weight is (1, 128, 1) -> (1, 128) row.
    w_row = w_conv.reshape(1, C).astype(jnp.float32)

    vmem = pl.BlockSpec(memory_space=pltpu.MemorySpace.VMEM)
    out_flat = pl.pallas_call(
        ramod3_kernel,
        out_shape=jax.ShapeDtypeStruct((N * L, C), jnp.float32),
        in_specs=[vmem, vmem, vmem, vmem],
        out_specs=vmem,
    )(x_flat, w_row, gamma.reshape(1, C), beta.reshape(1, C))

    return jnp.transpose(out_flat.reshape(N, L, C), (0, 2, 1))   # (N, 128, L)


def ramod3_reference(x_ncl, w_conv, gamma, beta):
    """Pure-JAX reference mirroring the PyTorch forward (training-mode BN)."""
    w = w_conv.reshape(C)
    x1 = jnp.mean(x_ncl, axis=2, keepdims=True)                  # (N, 128, 1)
    x2 = jnp.einsum('ncl,c->nl', x_ncl, w)[:, None, :]           # (N, 1, L)
    xall = x1 * x2                                               # (N, 128, L)
    mean = jnp.mean(xall, axis=(0, 2), keepdims=True)
    var = jnp.mean(jnp.square(xall - mean), axis=(0, 2), keepdims=True)
    y = (xall - mean) * jax.lax.rsqrt(var + EPS)
    y = y * gamma.reshape(1, -1, 1) + beta.reshape(1, -1, 1)
    s = 1.0 / (1.0 + jnp.exp(-y))
    return s * x_ncl + x_ncl + s


if __name__ == "__main__":
    key = jax.random.PRNGKey(0)
    kx, kw = jax.random.split(key, 2)

    x = jax.random.normal(kx, (N, C, L), dtype=jnp.float32)
    # Conv1d(128->1, kernel_size=1, bias=False) weight in PyTorch layout (1, 128, 1).
    w_conv = 0.05 * jax.random.normal(kw, (1, C, 1), dtype=jnp.float32)
    # BatchNorm1d(128) defaults from the module __init__: weight=1, bias=0.
    gamma = jnp.ones((C,), jnp.float32)
    beta = jnp.zeros((C,), jnp.float32)

    out = ramod3_forward(x, w_conv, gamma, beta)
    out = jax.block_until_ready(out)

    ref = ramod3_reference(x, w_conv, gamma, beta)
    ref = jax.block_until_ready(ref)

    assert out.shape == (N, C, L), out.shape
    max_diff = float(jnp.max(jnp.abs(out - ref)))
    assert max_diff < 5e-3, f"mismatch vs reference: max abs diff = {max_diff}"
    print("KERNEL_OK")
</pallas_src>

<mosaic_0001>
module attributes {stable_mosaic.version = 11 : i64} {
  func.func @ramod3_kernel(%arg0: memref<32x128xf32, #tpu.memory_space<vmem>>, %arg1: memref<1x128xf32, #tpu.memory_space<vmem>>, %arg2: memref<1x128xf32, #tpu.memory_space<vmem>>, %arg3: memref<1x128xf32, #tpu.memory_space<vmem>>, %arg4: memref<32x128xf32, #tpu.memory_space<vmem>>) attributes {dimension_semantics = [], scalar_prefetch = 0 : i64, scratch_operands = 0 : i64, tpu.core_type = #tpu.core_type<tc>} {
    %c0 = arith.constant 0 : index
    %c0_0 = arith.constant 0 : index
    %0 = vector.load %arg0[%c0, %c0_0] : memref<32x128xf32, #tpu.memory_space<vmem>>, vector<32x128xf32>
    %c0_1 = arith.constant 0 : index
    %c0_2 = arith.constant 0 : index
    %1 = vector.load %arg1[%c0_1, %c0_2] : memref<1x128xf32, #tpu.memory_space<vmem>>, vector<1x128xf32>
    %2 = vector.broadcast %1 : vector<1x128xf32> to vector<32x128xf32>
    %3 = arith.mulf %0, %2 : vector<32x128xf32>
    %cst = arith.constant dense<0.000000e+00> : vector<32xf32>
    %4 = vector.multi_reduction <add>, %3, %cst [1] : vector<32x128xf32> to vector<32xf32>
    %5 = vector.shape_cast %4 : vector<32xf32> to vector<32x1xf32>
    %6 = vector.extract_strided_slice %0 {offsets = [0, 0], sizes = [16, 128], strides = [1, 1]} : vector<32x128xf32> to vector<16x128xf32>
    %cst_3 = arith.constant dense<0.000000e+00> : vector<128xf32>
    %7 = vector.multi_reduction <add>, %6, %cst_3 [0] : vector<16x128xf32> to vector<128xf32>
    %8 = vector.shape_cast %7 : vector<128xf32> to vector<1x128xf32>
    %cst_4 = arith.constant 1.600000e+01 : f32
    %9 = vector.broadcast %cst_4 : f32 to vector<1x128xf32>
    %10 = arith.divf %8, %9 : vector<1x128xf32>
    %11 = vector.extract_strided_slice %5 {offsets = [0, 0], sizes = [16, 1], strides = [1, 1]} : vector<32x1xf32> to vector<16x1xf32>
    %12 = vector.broadcast %11 : vector<16x1xf32> to vector<16x128xf32>
    %13 = vector.broadcast %10 : vector<1x128xf32> to vector<16x128xf32>
    %14 = arith.mulf %12, %13 : vector<16x128xf32>
    %15 = vector.extract_strided_slice %0 {offsets = [16, 0], sizes = [16, 128], strides = [1, 1]} : vector<32x128xf32> to vector<16x128xf32>
    %cst_5 = arith.constant dense<0.000000e+00> : vector<128xf32>
    %16 = vector.multi_reduction <add>, %15, %cst_5 [0] : vector<16x128xf32> to vector<128xf32>
    %17 = vector.shape_cast %16 : vector<128xf32> to vector<1x128xf32>
    %cst_6 = arith.constant 1.600000e+01 : f32
    %18 = vector.broadcast %cst_6 : f32 to vector<1x128xf32>
    %19 = arith.divf %17, %18 : vector<1x128xf32>
    %20 = vector.extract_strided_slice %5 {offsets = [16, 0], sizes = [16, 1], strides = [1, 1]} : vector<32x1xf32> to vector<16x1xf32>
    %21 = vector.broadcast %20 : vector<16x1xf32> to vector<16x128xf32>
    %22 = vector.broadcast %19 : vector<1x128xf32> to vector<16x128xf32>
    %23 = arith.mulf %21, %22 : vector<16x128xf32>
    %24 = tpu.concatenate %14, %23 in 0 : vector<16x128xf32>, vector<16x128xf32> -> vector<32x128xf32>
    %cst_7 = arith.constant dense<0.000000e+00> : vector<128xf32>
    %25 = vector.multi_reduction <add>, %24, %cst_7 [0] : vector<32x128xf32> to vector<128xf32>
    %26 = vector.shape_cast %25 : vector<128xf32> to vector<1x128xf32>
    %cst_8 = arith.constant 3.200000e+01 : f32
    %27 = vector.broadcast %cst_8 : f32 to vector<1x128xf32>
    %28 = arith.divf %26, %27 : vector<1x128xf32>
    %29 = vector.broadcast %28 : vector<1x128xf32> to vector<32x128xf32>
    %30 = arith.subf %24, %29 : vector<32x128xf32>
    %31 = arith.mulf %30, %30 : vector<32x128xf32>
    %cst_9 = arith.constant dense<0.000000e+00> : vector<128xf32>
    %32 = vector.multi_reduction <add>, %31, %cst_9 [0] : vector<32x128xf32> to vector<128xf32>
    %33 = vector.shape_cast %32 : vector<128xf32> to vector<1x128xf32>
    %cst_10 = arith.constant 3.200000e+01 : f32
    %34 = vector.broadcast %cst_10 : f32 to vector<1x128xf32>
    %35 = arith.divf %33, %34 : vector<1x128xf32>
    %36 = vector.broadcast %28 : vector<1x128xf32> to vector<32x128xf32>
    %37 = arith.subf %24, %36 : vector<32x128xf32>
    %cst_11 = arith.constant 9.99999974E-6 : f32
    %38 = vector.broadcast %cst_11 : f32 to vector<1x128xf32>
    %39 = arith.addf %35, %38 : vector<1x128xf32>
    %40 = math.rsqrt %39 : vector<1x128xf32>
    %41 = vector.broadcast %40 : vector<1x128xf32> to vector<32x128xf32>
    %42 = arith.mulf %37, %41 : vector<32x128xf32>
    %c0_12 = arith.constant 0 : index
    %c0_13 = arith.constant 0 : index
    %43 = vector.load %arg2[%c0_12, %c0_13] : memref<1x128xf32, #tpu.memory_space<vmem>>, vector<1x128xf32>
    %44 = vector.broadcast %43 : vector<1x128xf32> to vector<32x128xf32>
    %45 = arith.mulf %42, %44 : vector<32x128xf32>
    %c0_14 = arith.constant 0 : index
    %c0_15 = arith.constant 0 : index
    %46 = vector.load %arg3[%c0_14, %c0_15] : memref<1x128xf32, #tpu.memory_space<vmem>>, vector<1x128xf32>
    %47 = vector.broadcast %46 : vector<1x128xf32> to vector<32x128xf32>
    %48 = arith.addf %45, %47 : vector<32x128xf32>
    %cst_16 = arith.constant 0.000000e+00 : f32
    %49 = vector.broadcast %cst_16 : f32 to vector<32x128xf32>
    %50 = arith.subf %49, %48 : vector<32x128xf32>
    %51 = math.exp %50 : vector<32x128xf32>
    %cst_17 = arith.constant 1.000000e+00 : f32
    %52 = vector.broadcast %cst_17 : f32 to vector<32x128xf32>
    %53 = arith.addf %52, %51 : vector<32x128xf32>
    %cst_18 = arith.constant 1.000000e+00 : f32
    %54 = vector.broadcast %cst_18 : f32 to vector<32x128xf32>
    %55 = arith.divf %54, %53 : vector<32x128xf32>
    %56 = arith.mulf %55, %0 : vector<32x128xf32>
    %57 = arith.addf %56, %0 : vector<32x128xf32>
    %58 = arith.addf %57, %55 : vector<32x128xf32>
    %c0_19 = arith.constant 0 : index
    %c0_20 = arith.constant 0 : index
    %59 = vector.load %arg4[%c0_19, %c0_20] : memref<32x128xf32, #tpu.memory_space<vmem>>, vector<32x128xf32>
    tpu.vector_store %arg4[%c0_19, %c0_20], %58 {strides = array<i32>} : memref<32x128xf32, #tpu.memory_space<vmem>>, vector<32x128xf32>,
    return
  }
}

</mosaic_0001>

<bundles_post_ra>
// kernel: tpu_custom_call.1
= control target key start
LH: loop header
LB: loop body
LE: loop exit
PB: predicated region body
PF: predicated region fallthrough
CT: control target
= control target key end

     0   :  { %9 = vsyncpa [#allocation3], 0  ;;  %s355_s0 = inlined_call_operand.hbm [shape: f32[32,128], index: 0, kind: input, shape index: {}]   ;;  %s356_s1 = inlined_call_operand.vmem [shape: f32[1,128], index: 1, kind: input, shape index: {}]   ;;  %s357_s2 = inlined_call_operand.vmem [shape: f32[1,128], index: 2, kind: input, shape index: {}]   ;;  %s358_s3 = inlined_call_operand.vmem [shape: f32[1,128], index: 3, kind: input, shape index: {}]   ;;  %s359_s4 = inlined_call_operand.hbm [shape: f32[32,128], index: 4, kind: output, shape index: {}]  }
   0x1   :  { %10 = vsyncpa [#allocation4], 0  ;;  %s263_s15 = smov [#allocation2]   ;;  %s215_s19 = scalar_lea.hbm %s355_s0, 512 }
   0x2   :  { %s16_s16 = sshll.u32 %s263_s15, 4  ;;  %p216_p0 = scmp.ne.s32.totalorder %s355_s0, %s215_s19  ;;  %s17_s16 = int_to_ptr.vmem [resolvable:$true] %s16_s16 }
   0x3   :  { %p219_p1 = scmp.lt.u32.totalorder %s215_s19, %s355_s0 }
   0x5   :  { %p221_p2 = pnand %p219_p1, %p216_p0 }
   0x7   :  { %224 = shalt.err (!%p221_p2)
}
   0x8   :  { %s225_s24 = scalar_lea.vmem %s17_s16, 512  ;;  %p230_p4 = scmp.lt.s32.totalorder %s17_s16, %s17_s16 }
   0x9   :  { %p226_p3 = scmp.ne.s32.totalorder %s17_s16, %s225_s24  ;;  %p231_p5 = scmp.lt.s32.totalorder %s225_s24, %s225_s24 }
   0xb   :  { %p232_p6 = por %p231_p5, %p230_p4 }
   0xd   :  { %p233_p7 = pnand %p232_p6, %p226_p3 }
   0xf   :  { %236 = shalt.err (!%p233_p7)
}
  0x10   :  { %s264_s25 = smov 128   ;;  %s265_s26 = smov 8  }
  0x11   :  { %22 = dma.hbm_to_vmem [thread:$0]  %s355_s0, 512, %s17_s16, [#allocation3], %s264_s25, %s264_s25, %s265_s26  }
  0x12   :  { %259 = dma.done.wait [#allocation3], 512  }
  0x13   :  { %260 = vsyncadd [#allocation3], 4294966784  ;;  %v307_v0 = vld [vmem:[#allocation2] sm:$0xff]  ;;  %v312_v2 = vld [vmem:[#allocation2 + $0x10] sm:$0xff] }
  0x14   :  { %v190_v1 = vld [vmem:[%s356_s1] ss:$0 sm:$0xff]  ;;  %v316_v5 = vld [vmem:[#allocation2 + $0x8] sm:$0xff]  ;;  %v318_v6 = vld [vmem:[#allocation2 + $0x18] sm:$0xff] }
  0x15   :  { %v43_v3 = vmul.f32 %v190_v1, %v307_v0  ;;  %v45_v4 = vmul.f32 %v190_v1, %v312_v2  ;;  %v44_v7 = vmul.f32 %v190_v1, %v316_v5  ;;  %v46_v8 = vmul.f32 %v190_v1, %v318_v6  ;;  %v191_v63 = vld [vmem:[%s357_s2] ss:$0 sm:$0xff]  ;;  %s266_s2 = smov [#allocation5]  }
  0x16   :  { %v55_v9 = vadd.f32 %v316_v5, %v307_v0  ;;  %v66_v10 = vadd.f32 %v318_v6, %v312_v2 }
  0x17   :  { %47 = vadd.xlane.f32.xlu0 %v43_v3  ;;  %51 = vadd.xlane.f32.xlu1 %v45_v4 }
  0x18   :  { %v56_v11 = vrot.slane %v55_v9, 4  ;;  %v67_v12 = vrot.slane %v66_v10, 4 }
  0x1a   :  { %v57_v13 = vadd.f32 %v56_v11, %v55_v9  ;;  %v68_v14 = vadd.f32 %v67_v12, %v66_v10 }
  0x1b   :  { %49 = vadd.xlane.f32.xlu0 %v44_v7  ;;  %53 = vadd.xlane.f32.xlu1 %v46_v8  ;;  %v192_v8 = vld [vmem:[%s358_s3] ss:$0 sm:$0xff]  ;;  %s178_s3 = sshll.u32 %s266_s2, 4  ;;  %s179_s3 = int_to_ptr.vmem [resolvable:$true] %s178_s3 }
  0x1c   :  { %v58_v15 = vrot.slane %v57_v13, 2  ;;  %v69_v16 = vrot.slane %v68_v14, 2  ;;  %s237_s7 = scalar_lea.vmem %s179_s3, 512  ;;  %p242_p9 = scmp.lt.s32.totalorder %s179_s3, %s179_s3 }
  0x1d   :  { %p238_p8 = scmp.ne.s32.totalorder %s179_s3, %s237_s7  ;;  %p243_p10 = scmp.lt.s32.totalorder %s237_s7, %s237_s7 }
  0x1e   :  { %v59_v17 = vadd.f32 %v58_v15, %v57_v13  ;;  %v70_v18 = vadd.f32 %v69_v16, %v68_v14 }
  0x1f   :  { %p244_p11 = por %p243_p10, %p242_p9 }
  0x20   :  { %v60_v19 = vrot.slane %v59_v17, 1  ;;  %v71_v20 = vrot.slane %v70_v18, 1 }
  0x21   :  { %p245_p12 = pnand %p244_p11, %p238_p8 }
  0x22   :  { %v61_v21 = vadd.f32 %v60_v19, %v59_v17  ;;  %v72_v22 = vadd.f32 %v71_v20, %v70_v18 }
  0x24   :  { %v63_v25 = vmul.f32 0.0625, %v61_v21  ;;  %v73_v26 = vmul.f32 0.0625, %v72_v22 }
  0xa4   :  { %v48_v23 = vpop.xlane.xlu0 %47  ;;  %v52_v24 = vpop.xlane.xlu1 %51 }
  0xa5   :  { %v64_v29 = vmul.f32 %v63_v25, %v48_v23  ;;  %v74_v31 = vmul.f32 %v73_v26, %v52_v24 }
  0xa8   :  { %v50_v27 = vpop.xlane.xlu0 %49  ;;  %v54_v28 = vpop.xlane.xlu1 %53 }
  0xa9   :  { %v65_v30 = vmul.f32 %v63_v25, %v50_v27  ;;  %v75_v33 = vmul.f32 %v73_v26, %v54_v28 }
  0xab   :  { %v76_v32 = vadd.f32 %v65_v30, %v64_v29 }
  0xad   :  { %v77_v34 = vadd.f32 %v76_v32, %v74_v31 }
  0xaf   :  { %v78_v35 = vadd.f32 %v77_v34, %v75_v33 }
  0xb1   :  { %v79_v36 = vrot.slane %v78_v35, 4 }
  0xb3   :  { %v80_v37 = vadd.f32 %v79_v36, %v78_v35 }
  0xb5   :  { %v81_v38 = vrot.slane %v80_v37, 2 }
  0xb7   :  { %v82_v39 = vadd.f32 %v81_v38, %v80_v37 }
  0xb9   :  { %v83_v40 = vrot.slane %v82_v39, 1 }
  0xbb   :  { %v84_v41 = vadd.f32 %v83_v40, %v82_v39 }
  0xbd   :  { %v86_v42 = vmul.f32 0.03125, %v84_v41 }
  0xbf   :  { %v87_v43 = vsub.f32 %v64_v29, %v86_v42  ;;  %v88_v44 = vsub.f32 %v65_v30, %v86_v42  ;;  %v89_v45 = vsub.f32 %v74_v31, %v86_v42  ;;  %v90_v46 = vsub.f32 %v75_v33, %v86_v42 }
  0xc1   :  { %v91_v47 = vmul.f32 %v87_v43, %v87_v43  ;;  %v92_v48 = vmul.f32 %v88_v44, %v88_v44  ;;  %v93_v49 = vmul.f32 %v89_v45, %v89_v45  ;;  %v94_v51 = vmul.f32 %v90_v46, %v90_v46 }
  0xc3   :  { %v95_v50 = vadd.f32 %v92_v48, %v91_v47 }
  0xc5   :  { %v96_v52 = vadd.f32 %v95_v50, %v93_v49 }
  0xc7   :  { %v97_v53 = vadd.f32 %v96_v52, %v94_v51 }
  0xc9   :  { %v98_v54 = vrot.slane %v97_v53, 4 }
  0xcb   :  { %v99_v55 = vadd.f32 %v98_v54, %v97_v53 }
  0xcd   :  { %v100_v56 = vrot.slane %v99_v55, 2 }
  0xcf   :  { %v101_v57 = vadd.f32 %v100_v56, %v99_v55 }
  0xd1   :  { %v102_v58 = vrot.slane %v101_v57, 1 }
  0xd3   :  { %v103_v59 = vadd.f32 %v102_v58, %v101_v57 }
  0xd5   :  { %v104_v60 = vmul.f32 0.03125, %v103_v59 }
  0xd7   :  { %v105_v61 = vadd.f32 1e-05, %v104_v60 }
  0xd9   :  { %197 = vrsqrt.f32 %v105_v61 }
  0xe3   :  { %v198_v62 = vpop.eup %197 }
  0xe4   :  { %v107_v1 = vmul.f32 %v198_v62, %v87_v43  ;;  %v108_v3 = vmul.f32 %v198_v62, %v88_v44  ;;  %v109_v4 = vmul.f32 %v198_v62, %v89_v45  ;;  %v110_v7 = vmul.f32 %v198_v62, %v90_v46 }
  0xe6   :  { %v118_v9 = vmul.f32 %v191_v63, %v107_v1  ;;  %v119_v10 = vmul.f32 %v191_v63, %v108_v3  ;;  %v120_v11 = vmul.f32 %v191_v63, %v109_v4  ;;  %v121_v12 = vmul.f32 %v191_v63, %v110_v7 }
  0xe8   :  { %v129_v13 = vadd.f32 %v192_v8, %v118_v9  ;;  %v130_v14 = vadd.f32 %v192_v8, %v119_v10  ;;  %v131_v15 = vadd.f32 %v192_v8, %v120_v11  ;;  %v132_v16 = vadd.f32 %v192_v8, %v121_v12 }
  0xea   :  { %v133_v17 = vsub.f32 0.0, %v129_v13  ;;  %v134_v18 = vsub.f32 0.0, %v130_v14  ;;  %v135_v19 = vsub.f32 0.0, %v131_v15  ;;  %v136_v20 = vsub.f32 0.0, %v132_v16 }
  0xec   :  { %v137_v21 = vmul.f32 1.442695, %v133_v17  ;;  %v139_v22 = vmul.f32 1.442695, %v134_v18  ;;  %v141_v23 = vmul.f32 1.442695, %v135_v19 }
  0xed   :  { %v143_v24 = vmul.f32 1.442695, %v136_v20 }
  0xee   :  { %199 = vpow2.f32 %v137_v21 }
  0xef   :  { %201 = vpow2.f32 %v139_v22 }
  0xf0   :  { %203 = vpow2.f32 %v141_v23 }
  0xf1   :  { %205 = vpow2.f32 %v143_v24 }
  0xf8   :  { %v200_v25 = vpop.eup %199 }
  0xf9   :  { %v202_v26 = vpop.eup %201  ;;  %v145_v27 = vadd.f32 1.0, %v200_v25 }
  0xfa   :  { %v204_v28 = vpop.eup %203  ;;  %v146_v29 = vadd.f32 1.0, %v202_v26 }
  0xfb   :  { %v206_v30 = vpop.eup %205  ;;  %v147_v31 = vadd.f32 1.0, %v204_v28  ;;  %207 = vrcp.f32 %v145_v27 }
  0xfc   :  { %v148_v32 = vadd.f32 1.0, %v206_v30  ;;  %209 = vrcp.f32 %v146_v29 }
  0xfd   :  { %211 = vrcp.f32 %v147_v31 }
  0xfe   :  { %213 = vrcp.f32 %v148_v32 }
 0x105   :  { %v208_v33 = vpop.eup %207 }
 0x106   :  { %v210_v34 = vpop.eup %209  ;;  %v157_v35 = vmul.f32 %v208_v33, %v307_v0 }
 0x107   :  { %v212_v36 = vpop.eup %211  ;;  %v158_v37 = vmul.f32 %v210_v34, %v316_v5 }
 0x108   :  { %v214_v38 = vpop.eup %213  ;;  %v159_v39 = vmul.f32 %v212_v36, %v312_v2  ;;  %v161_v40 = vadd.f32 %v157_v35, %v307_v0 }
 0x109   :  { %v160_v41 = vmul.f32 %v214_v38, %v318_v6  ;;  %v162_v42 = vadd.f32 %v158_v37, %v316_v5 }
 0x10a   :  { %v163_v43 = vadd.f32 %v159_v39, %v312_v2  ;;  %v165_v44 = vadd.f32 %v208_v33, %v161_v40 }
 0x10b   :  { %v164_v45 = vadd.f32 %v160_v41, %v318_v6  ;;  %v166_v46 = vadd.f32 %v210_v34, %v162_v42 }
 0x10c   :  { %v167_v47 = vadd.f32 %v212_v36, %v163_v43  ;;  %169 = vst [vmem:[#allocation5] sm:$0xff] %v165_v44 }
 0x10d   :  { %v168_v48 = vadd.f32 %v214_v38, %v164_v45  ;;  %170 = vst [vmem:[#allocation5 + $0x8] sm:$0xff] %v166_v46 }
 0x10e   :  { %171 = vst [vmem:[#allocation5 + $0x10] sm:$0xff] %v167_v47 }
 0x10f   :  { %172 = vst [vmem:[#allocation5 + $0x18] sm:$0xff] %v168_v48 }
 0x110   :  { %248 = shalt.err (!%p245_p12)
}
 0x111   :  { %s249_s10 = scalar_lea.hbm %s359_s4, 512 }
 0x112   :  { %p250_p13 = scmp.ne.s32.totalorder %s359_s4, %s249_s10  ;;  %p253_p0 = scmp.lt.u32.totalorder %s249_s10, %s359_s4 }
 0x114   :  { %p255_p1 = pnand %p253_p0, %p250_p13 }
 0x116   :  { %258 = shalt.err (!%p255_p1)
}
 0x117   :  { %184 = dma.vmem_to_hbm [thread:$0]  %s179_s3, 512, %s359_s4, [#allocation4], %s264_s25, %s264_s25, %s265_s26  }
 0x118   :  { %261 = dma.done.wait [#allocation4], 512  }
 0x119   :  { %262 = vsyncadd [#allocation4], 4294966784 }
 0x11a   :  { %188 = vsyncpa [#allocation3], 1 }
 0x11b   :  { %189 = vsyncpa [#allocation4], 1 }

</bundles_post_ra>
